<compile_context>
chip_gen: v7x
topology: tpu7x:2x2x1
jax: 0.10.0
libtpu: 0.0.40
codegen_flags: <defaults>
</compile_context>

<pallas_src>
import numpy as np
import jax
import jax.numpy as jnp
from jax import lax
from jax.experimental import pallas as pl
from jax.experimental.pallas import tpu as pltpu

EPSILON = 1e-06   # matches the module: nn.BatchNorm1d(cout, eps=EPSILON)
LANE = 128


def _round_up(x, m):
    return ((x + m - 1) // m) * m


def dense_kernel(x_ref, wt_ref, gb_ref, o_ref, acc_ref):
    """One (cout-tile, cin-tile) grid step of Linear -> BN(train) -> tanh."""
    k = pl.program_id(1)

    @pl.when(k == 0)
    def _init():
        acc_ref[...] = jnp.zeros_like(acc_ref)

    # MXU partial product for this K tile; f32 accumulation.
    acc_ref[...] += jnp.dot(x_ref[...], wt_ref[...],
                            preferred_element_type=jnp.float32)

    @pl.when(k == pl.num_programs(1) - 1)
    def _finalize():
        y = acc_ref[...]
        # BatchNorm1d training-mode forward: batch statistics, biased variance.
        mean = jnp.mean(y, axis=0, keepdims=True)
        yc = y - mean                                # centered once, reused twice
        var = jnp.mean(yc * yc, axis=0, keepdims=True)
        gamma = gb_ref[0:1, :]
        beta = gb_ref[1:2, :]
        scale = gamma * lax.rsqrt(var + EPSILON)     # gamma folded into (1,TN) scale
        o_ref[...] = jnp.tanh(yc * scale + beta).astype(o_ref.dtype)


def prepare_dense_params(weight, gamma, beta, *, tile_n=256):
    """One-time parameter preprocessing (do NOT call per forward).

    weight: [cout, cin] (PyTorch nn.Linear layout); gamma/beta: [cout] or [1, cout].
    Returns (wt, gb, cout) with wt: [cin, cout_p] and gb: [2, cout_p],
    cout_p padded to a lane-dense multiple of tile_n.
    """
    cout, cin = weight.shape
    tile_n = max(LANE, (int(tile_n) // LANE) * LANE)
    cout_lane = _round_up(cout, LANE)
    tile_n = min(tile_n, cout_lane)
    cout_p = _round_up(cout, tile_n)

    wt = jnp.asarray(weight).T                                     # [cin, cout]
    gamma = jnp.asarray(gamma).reshape(1, cout).astype(jnp.float32)
    beta = jnp.asarray(beta).reshape(1, cout).astype(jnp.float32)
    gb = jnp.concatenate([gamma, beta], axis=0)                    # [2, cout]

    pad = cout_p - cout
    if pad:
        wt = jnp.pad(wt, ((0, 0), (0, pad)))
        gb = jnp.pad(gb, ((0, 0), (0, pad)))
    return wt, gb, cout


def dense_forward(x, wt, gb, cout, *, tile_n=256, tile_k=512,
                  matmul_dtype=None, out_dtype=jnp.float32):
    """Fused Linear -> BatchNorm1d(train) -> tanh.

    x:  [B, cin] float32
    wt: [cin, cout_p]  pre-transposed, pre-padded (see prepare_dense_params)
    gb: [2, cout_p]    stacked (gamma, beta), pre-padded
    The linear bias cancels exactly under training-mode BN and is never loaded.
    matmul_dtype=jnp.bfloat16 halves matmul-operand DMA bytes and is a win on
    every generation (v5e/v6e/v7x MXUs are natively bf16); BN/tanh stay f32.
    """
    B, cin = x.shape
    cin_w, cout_p = wt.shape
    assert cin == cin_w, (cin, cin_w)
    assert gb.shape == (2, cout_p)

    # N tile: lane-dense multiple of 128 that divides cout_p.
    tile_n = max(LANE, (int(tile_n) // LANE) * LANE)
    tile_n = min(tile_n, cout_p)
    while cout_p % tile_n:
        tile_n -= LANE
    # K tile: multiple of 128 that divides cin, else fall back to full cin.
    tile_k = min(int(tile_k), cin)
    if tile_k % LANE or cin % tile_k:
        tile_k = cin

    if matmul_dtype is not None:
        x = x.astype(matmul_dtype)
        wt = wt.astype(matmul_dtype)

    grid = (cout_p // tile_n, cin // tile_k)   # reduction (K) axis last

    # Rough VMEM budget: double-buffered blocks + accumulator, 2x headroom,
    # capped at v7x's 64 MiB physical VMEM.
    ix = jnp.dtype(x.dtype).itemsize
    iw = jnp.dtype(wt.dtype).itemsize
    io = jnp.dtype(out_dtype).itemsize
    blk = (2 * B * tile_k * ix            # x (double-buffered)
           + 2 * tile_k * tile_n * iw     # wt (double-buffered)
           + 2 * 2 * tile_n * 4           # gamma/beta
           + 2 * B * tile_n * io          # output (double-buffered)
           + B * tile_n * 4)              # f32 accumulator scratch
    vmem_limit = int(min(max(2 * blk, 32 << 20), 64 << 20))

    out = pl.pallas_call(
        dense_kernel,
        out_shape=jax.ShapeDtypeStruct((B, cout_p), out_dtype),
        grid=grid,
        in_specs=[
            pl.BlockSpec((B, tile_k), lambda j, k: (0, k)),        # x
            pl.BlockSpec((tile_k, tile_n), lambda j, k: (k, j)),   # wt
            pl.BlockSpec((2, tile_n), lambda j, k: (0, j)),        # gamma/beta
        ],
        out_specs=pl.BlockSpec((B, tile_n), lambda j, k: (0, j)),
        scratch_shapes=[pltpu.VMEM((B, tile_n), jnp.float32)],
        compiler_params=pltpu.CompilerParams(
            dimension_semantics=("parallel", "arbitrary"),
            vmem_limit_bytes=vmem_limit,
        ),
    )(x, wt, gb)

    return out[:, :cout]


def _reference(x, weight, bias, gamma, beta):
    """Pure-JAX reference with the full module math (bias included)."""
    y = x @ weight.T + bias
    mean = jnp.mean(y, axis=0, keepdims=True)
    var = jnp.mean((y - mean) ** 2, axis=0, keepdims=True)
    return jnp.tanh((y - mean) / jnp.sqrt(var + EPSILON) * gamma + beta)


def _make_case(key, B, cin, cout):
    kx, kw, kb = jax.random.split(key, 3)
    x = jax.random.normal(kx, (B, cin), dtype=jnp.float32)
    # Parameters matching the PyTorch __init__:
    #   linear.weight ~ N(0, (5/sqrt(cin+cout))^2), shape [cout, cin]
    #   linear.bias   ~ U(-1/sqrt(cin), 1/sqrt(cin))
    #   bn.weight = 1, bn.bias = 0
    std = 5.0 / np.sqrt(cin + cout)
    weight = std * jax.random.normal(kw, (cout, cin), dtype=jnp.float32)
    bound = 1.0 / np.sqrt(cin)
    bias = jax.random.uniform(kb, (1, cout), dtype=jnp.float32,
                              minval=-bound, maxval=bound)
    gamma = jnp.ones((1, cout), dtype=jnp.float32)
    beta = jnp.zeros((1, cout), dtype=jnp.float32)
    return x, weight, bias, gamma, beta


if __name__ == "__main__":
    k1, k2 = jax.random.split(jax.random.PRNGKey(0))

    # Case 1: tiny layer matching the DeepBSDE solver sizes (single grid step).
    B, cin, cout = 8, 32, 32
    x, weight, bias, gamma, beta = _make_case(k1, B, cin, cout)
    wt, gb, _ = prepare_dense_params(weight, gamma, beta)        # one-time prep
    out = dense_forward(x, wt, gb, cout)
    jax.block_until_ready(out)
    ref = _reference(x, weight, bias, gamma, beta)
    np.testing.assert_allclose(np.asarray(out), np.asarray(ref),
                               rtol=1e-5, atol=1e-5)
    assert out.shape == (B, cout)

    # Case 2: exercises the K-reduction axis, N tiling and cout padding (f32).
    B, cin, cout = 8, 256, 160
    x, weight, bias, gamma, beta = _make_case(k2, B, cin, cout)
    wt, gb, _ = prepare_dense_params(weight, gamma, beta, tile_n=128)
    out = dense_forward(x, wt, gb, cout, tile_n=128, tile_k=128)
    jax.block_until_ready(out)
    ref = _reference(x, weight, bias, gamma, beta)
    np.testing.assert_allclose(np.asarray(out), np.asarray(ref),
                               rtol=1e-5, atol=1e-5)
    assert out.shape == (B, cout)

    # Case 3: bf16 MXU operands (recommended on all generations, incl. v5e).
    # Batch statistics shift slightly with bf16 products -> loose tolerance
    # (tanh output is bounded, so absolute tolerance is meaningful).
    out_bf16 = dense_forward(x, wt, gb, cout, tile_n=128, tile_k=128,
                             matmul_dtype=jnp.bfloat16)
    jax.block_until_ready(out_bf16)
    np.testing.assert_allclose(np.asarray(out_bf16), np.asarray(ref),
                               rtol=3e-2, atol=3e-2)

    print("KERNEL_OK")
</pallas_src>

<mosaic_0001>
module attributes {stable_mosaic.version = 11 : i64} {
  func.func @dense_kernel(%arg0: i32, %arg1: i32, %arg2: memref<8x32xf32, #tpu.memory_space<vmem>>, %arg3: memref<32x128xf32, #tpu.memory_space<vmem>>, %arg4: memref<2x128xf32, #tpu.memory_space<vmem>>, %arg5: memref<8x128xf32, #tpu.memory_space<vmem>>, %arg6: memref<8x128xf32, #tpu.memory_space<vmem>>) attributes {dimension_semantics = [#tpu.dimension_semantics<parallel>, #tpu.dimension_semantics<arbitrary>], iteration_bounds = array<i64: 1, 1>, scalar_prefetch = 0 : i64, scratch_operands = 1 : i64, tpu.core_type = #tpu.core_type<tc>, window_params = [{transform_indices = @transform_0, window_bounds = array<i64: 8, 32>}, {transform_indices = @transform_1, window_bounds = array<i64: 32, 128>}, {transform_indices = @transform_2, window_bounds = array<i64: 2, 128>}, {transform_indices = @transform_3, window_bounds = array<i64: 8, 128>}]} {
    %c0_i32 = arith.constant 0 : i32
    %0 = arith.cmpi eq, %arg1, %c0_i32 : i32
    %1 = arith.extui %0 : i1 to i32
    %c0_i32_0 = arith.constant 0 : i32
    %2 = arith.cmpi ne, %1, %c0_i32_0 : i32
    scf.if %2 {
      %cst_10 = arith.constant 0.000000e+00 : f32
      %12 = vector.broadcast %cst_10 : f32 to vector<8x128xf32>
      %c0_11 = arith.constant 0 : index
      %c0_12 = arith.constant 0 : index
      %13 = vector.load %arg6[%c0_11, %c0_12] : memref<8x128xf32, #tpu.memory_space<vmem>>, vector<8x128xf32>
      tpu.vector_store %arg6[%c0_11, %c0_12], %12 {strides = array<i32>} : memref<8x128xf32, #tpu.memory_space<vmem>>, vector<8x128xf32>,
    } else {
    }
    %c0 = arith.constant 0 : index
    %c0_1 = arith.constant 0 : index
    %3 = vector.load %arg6[%c0, %c0_1] : memref<8x128xf32, #tpu.memory_space<vmem>>, vector<8x128xf32>
    %c0_2 = arith.constant 0 : index
    %c0_3 = arith.constant 0 : index
    %4 = vector.load %arg2[%c0_2, %c0_3] : memref<8x32xf32, #tpu.memory_space<vmem>>, vector<8x32xf32>
    %c0_4 = arith.constant 0 : index
    %c0_5 = arith.constant 0 : index
    %5 = vector.load %arg3[%c0_4, %c0_5] : memref<32x128xf32, #tpu.memory_space<vmem>>, vector<32x128xf32>
    %cst = arith.constant dense<0.000000e+00> : vector<8x128xf32>
    %6 = tpu.matmul %4, %5, %cst {dimension_numbers = #tpu.dot_dimension_numbers<[1], [0], [0], [1], [0, 0, 1, 1], [], []>} : vector<8x32xf32>, vector<32x128xf32>, vector<8x128xf32> -> vector<8x128xf32>
    %7 = arith.addf %3, %6 : vector<8x128xf32>
    %c0_6 = arith.constant 0 : index
    %c0_7 = arith.constant 0 : index
    %8 = vector.load %arg6[%c0_6, %c0_7] : memref<8x128xf32, #tpu.memory_space<vmem>>, vector<8x128xf32>
    tpu.vector_store %arg6[%c0_6, %c0_7], %7 {strides = array<i32>} : memref<8x128xf32, #tpu.memory_space<vmem>>, vector<8x128xf32>,
    %c0_i32_8 = arith.constant 0 : i32
    %9 = arith.cmpi eq, %arg1, %c0_i32_8 : i32
    %10 = arith.extui %9 : i1 to i32
    %c0_i32_9 = arith.constant 0 : i32
    %11 = arith.cmpi ne, %10, %c0_i32_9 : i32
    scf.if %11 {
      %c0_10 = arith.constant 0 : index
      %c0_11 = arith.constant 0 : index
      %12 = vector.load %arg6[%c0_10, %c0_11] : memref<8x128xf32, #tpu.memory_space<vmem>>, vector<8x128xf32>
      %cst_12 = arith.constant dense<0.000000e+00> : vector<128xf32>
      %13 = vector.multi_reduction <add>, %12, %cst_12 [0] : vector<8x128xf32> to vector<128xf32>
      %14 = vector.shape_cast %13 : vector<128xf32> to vector<1x128xf32>
      %cst_13 = arith.constant 8.000000e+00 : f32
      %15 = vector.broadcast %cst_13 : f32 to vector<1x128xf32>
      %16 = arith.divf %14, %15 : vector<1x128xf32>
      %17 = vector.broadcast %16 : vector<1x128xf32> to vector<8x128xf32>
      %18 = arith.subf %12, %17 : vector<8x128xf32>
      %19 = arith.mulf %18, %18 : vector<8x128xf32>
      %cst_14 = arith.constant dense<0.000000e+00> : vector<128xf32>
      %20 = vector.multi_reduction <add>, %19, %cst_14 [0] : vector<8x128xf32> to vector<128xf32>
      %21 = vector.shape_cast %20 : vector<128xf32> to vector<1x128xf32>
      %cst_15 = arith.constant 8.000000e+00 : f32
      %22 = vector.broadcast %cst_15 : f32 to vector<1x128xf32>
      %23 = arith.divf %21, %22 : vector<1x128xf32>
      %c0_16 = arith.constant 0 : index
      %c0_17 = arith.constant 0 : index
      %24 = vector.load %arg4[%c0_16, %c0_17] : memref<2x128xf32, #tpu.memory_space<vmem>>, vector<1x128xf32>
      %c1 = arith.constant 1 : index
      %c0_18 = arith.constant 0 : index
      %25 = vector.load %arg4[%c1, %c0_18] : memref<2x128xf32, #tpu.memory_space<vmem>>, vector<1x128xf32>
      %cst_19 = arith.constant 9.99999997E-7 : f32
      %26 = vector.broadcast %cst_19 : f32 to vector<1x128xf32>
      %27 = arith.addf %23, %26 : vector<1x128xf32>
      %28 = math.rsqrt %27 : vector<1x128xf32>
      %29 = arith.mulf %24, %28 : vector<1x128xf32>
      %30 = vector.broadcast %29 : vector<1x128xf32> to vector<8x128xf32>
      %31 = arith.mulf %18, %30 : vector<8x128xf32>
      %32 = vector.broadcast %25 : vector<1x128xf32> to vector<8x128xf32>
      %33 = arith.addf %31, %32 : vector<8x128xf32>
      %34 = math.tanh %33 : vector<8x128xf32>
      %c0_20 = arith.constant 0 : index
      %c0_21 = arith.constant 0 : index
      %35 = vector.load %arg5[%c0_20, %c0_21] : memref<8x128xf32, #tpu.memory_space<vmem>>, vector<8x128xf32>
      tpu.vector_store %arg5[%c0_20, %c0_21], %34 {strides = array<i32>} : memref<8x128xf32, #tpu.memory_space<vmem>>, vector<8x128xf32>,
    } else {
    }
    return
  }
  func.func @transform_0(%arg0: i32, %arg1: i32) -> (i32, i32) {
    %c0_i32 = arith.constant 0 : i32
    %c0_i32_0 = arith.constant 0 : i32
    return %c0_i32, %arg1 : i32, i32
  }
  func.func @transform_1(%arg0: i32, %arg1: i32) -> (i32, i32) {
    %c0_i32 = arith.constant 0 : i32
    return %arg1, %arg0 : i32, i32
  }
  func.func @transform_2(%arg0: i32, %arg1: i32) -> (i32, i32) {
    %c0_i32 = arith.constant 0 : i32
    %c0_i32_0 = arith.constant 0 : i32
    return %c0_i32, %arg0 : i32, i32
  }
  func.func @transform_3(%arg0: i32, %arg1: i32) -> (i32, i32) {
    %c0_i32 = arith.constant 0 : i32
    %c0_i32_0 = arith.constant 0 : i32
    return %c0_i32, %arg0 : i32, i32
  }
}

</mosaic_0001>

<bundles_post_ra>
// kernel: tpu_custom_call.1
= control target key start
LH: loop header
LB: loop body
LE: loop exit
PB: predicated region body
PF: predicated region fallthrough
CT: control target
= control target key end

     0   :  { %8 = vsyncpa [#allocation4], 0  ;;  %s367_s0 = inlined_call_operand.hbm [shape: f32[8,32], index: 0, kind: input, shape index: {}]   ;;  %s368_s1 = inlined_call_operand.hbm [shape: f32[32,128], index: 1, kind: input, shape index: {}]   ;;  %s369_s2 = inlined_call_operand.vmem [shape: f32[2,128], index: 2, kind: input, shape index: {}]   ;;  %s370_s3 = inlined_call_operand.hbm [shape: f32[8,128], index: 3, kind: output, shape index: {}]  }
   0x1   :  { %9 = vsyncpa [#allocation7], 0 }
   0x2   :  { %10 = vsyncpa [#allocation5], 0  ;;  %s290_s12 = smov [#allocation3]   ;;  %s291_s14 = smov [#allocation6]  }
   0x3   :  { %s17_s13 = sshll.u32 %s290_s12, 4  ;;  %s26_s15 = sshll.u32 %s291_s14, 4  ;;  %s18_s13 = int_to_ptr.vmem [resolvable:$true] %s17_s13  ;;  %s318_s15 = int_to_ptr.vmem [resolvable:$true] %s26_s15 }
   0x4   :  { %s218_s18 = scalar_lea.hbm %s367_s0, 128 }
   0x5   :  { %p219_p0 = scmp.ne.s32.totalorder %s367_s0, %s218_s18  ;;  %p222_p1 = scmp.lt.u32.totalorder %s218_s18, %s367_s0 }
   0x7   :  { %p224_p2 = pnand %p222_p1, %p219_p0 }
   0x9   :  { %227 = shalt.err (!%p224_p2)
}
   0xa   :  { %s228_s23 = scalar_lea.vmem %s18_s13, 128  ;;  %p233_p4 = scmp.lt.s32.totalorder %s18_s13, %s18_s13 }
   0xb   :  { %p229_p3 = scmp.ne.s32.totalorder %s18_s13, %s228_s23  ;;  %p234_p5 = scmp.lt.s32.totalorder %s228_s23, %s228_s23 }
   0xd   :  { %p235_p6 = por %p234_p5, %p233_p4 }
   0xf   :  { %p236_p7 = pnand %p235_p6, %p229_p3 }
  0x11   :  { %239 = shalt.err (!%p236_p7)
}
  0x12   :  { %20 = dma.hbm_to_vmem [thread:$0]  %s367_s0, 128, %s18_s13, [#allocation4]  }
  0x13   :  { %s240_s28 = scalar_lea.hbm %s368_s1, 512 }
  0x14   :  { %p241_p8 = scmp.ne.s32.totalorder %s368_s1, %s240_s28  ;;  %p244_p9 = scmp.lt.u32.totalorder %s240_s28, %s368_s1 }
  0x16   :  { %p246_p10 = pnand %p244_p9, %p241_p8 }
  0x18   :  { %249 = shalt.err (!%p246_p10)
}
  0x19   :  { %s250_s6 = scalar_lea.vmem %s318_s15, 512  ;;  %p255_p12 = scmp.lt.s32.totalorder %s318_s15, %s318_s15 }
  0x1a   :  { %p251_p11 = scmp.ne.s32.totalorder %s318_s15, %s250_s6  ;;  %p256_p13 = scmp.lt.s32.totalorder %s250_s6, %s250_s6 }
  0x1c   :  { %p257_p0 = por %p256_p13, %p255_p12 }
  0x1e   :  { %p258_p1 = pnand %p257_p0, %p251_p11 }
  0x20   :  { %261 = shalt.err (!%p258_p1)
}
  0x21   :  { %s292_s0 = smov 128   ;;  %s293_s7 = smov 8  }
  0x22   :  { %32 = dma.hbm_to_vmem [thread:$0]  %s368_s1, 512, %s318_s15, [#allocation7], %s292_s0, %s292_s0, %s293_s7  }
  0x23   :  { %284 = dma.done.wait [#allocation4], 128  }
  0x24   :  { %285 = vsyncadd [#allocation4], 4294967168 }
  0x25   :  { %286 = dma.done.wait [#allocation7], 512  }
  0x26   :  { %287 = vsyncadd [#allocation7], 4294966784  ;;  %v294_v0 = vmov 0.0|0.0   ;;  %vm295_vm0 = vmmov 0   ;;  %v296_v1 = vmov 0.0   ;;  %v48_v2 = vld [vmem:[#allocation6] sm:$0xff]  ;;  %v154_v28 = vlaneseq }
  0x27   :  { %200 = vmatprep.subr.bf16.mxu0 %v294_v0  ;;  %197 = vmatprep.mubr.msk.f32.mxu0 %vm295_vm0, %v296_v1  ;;  %v49_v3 = vld [vmem:[#allocation6 + $0x8] sm:$0xff]  ;;  %v50_v4 = vld [vmem:[#allocation6 + $0x10] sm:$0xff]  ;;  %v51_v6 = vld [vmem:[#allocation6 + $0x18] sm:$0xff]  ;;  %vm52_vm1 = vcmask 261120   ;;  %s297_s13 = smov [#allocation8]  }
  0x28   :  { %v201_v5 = vpack.c.bf16 %v49_v3, %v48_v2  ;;  %v204_v7 = vpack.c.bf16 %v51_v6, %v50_v4  ;;  %v47_v8 = vld [vmem:[#allocation3] sm:$0xff]  ;;  %v155_v29 = vshrl.u32 %v154_v28, 7  ;;  %s172_s14 = sshll.u32 %s297_s13, 4  ;;  %s173_s14 = int_to_ptr.vmem [resolvable:$true] %s172_s14 }
  0x29   :  { %v149_v30 = vld [vmem:[%s369_s2] sm:$0x1]  ;;  %v183_v35 = vld [vmem:[%s369_s2 + $0x1] ss:$0 sm:$0xff]  ;;  %s262_s15 = scalar_lea.vmem %s173_s14, 128  ;;  %p267_p3 = scmp.lt.s32.totalorder %s173_s14, %s173_s14 }
  0x2a   :  { %202 = vmatpush3.bf16.msra.mxu0 %v201_v5  ;;  %v156_v31 = vsub.s32 0, %v155_v29  ;;  %p263_p2 = scmp.ne.s32.totalorder %s173_s14, %s262_s15  ;;  %p268_p4 = scmp.lt.s32.totalorder %s262_s15, %s262_s15 }
  0x2b   :  { %203 = vmatprep.subr.bf16.mxu0 %v294_v0 }
  0x2c   :  { %p269_p5 = por %p268_p4, %p267_p3 }
  0x2e   :  { %205 = vmatpush3.bf16.msra.mxu0 %v204_v7  ;;  %p270_p6 = pnand %p269_p5, %p263_p2 }
  0x31   :  { %198 = vmatmul.mubr.msk.f32.vlgmr.msra.gmra.mrb[0].mxu0 %vm52_vm1, %v47_v8 }
 0x104   :  { %v122_v9 = vpop.f32.mrb[0].mxu0 }
 0x105   :  { %v132_v10 = vrot.slane %v122_v9, 4  ;;  %v199_v11 = vpop.f32.mrb[1].mxu0 }
 0x107   :  { %v133_v12 = vadd.f32 %v132_v10, %v122_v9 }
 0x109   :  { %v134_v13 = vrot.slane %v133_v12, 2 }
 0x10b   :  { %v135_v14 = vadd.f32 %v134_v13, %v133_v12 }
 0x10d   :  { %v136_v15 = vrot.slane %v135_v14, 1 }
 0x10f   :  { %v137_v16 = vadd.f32 %v136_v15, %v135_v14 }
 0x111   :  { %v139_v17 = vmul.f32 0.125, %v137_v16 }
 0x113   :  { %v140_v18 = vsub.f32 %v122_v9, %v139_v17 }
 0x115   :  { %v141_v19 = vmul.f32 %v140_v18, %v140_v18 }
 0x117   :  { %v142_v20 = vrot.slane %v141_v19, 4 }
 0x119   :  { %v143_v21 = vadd.f32 %v142_v20, %v141_v19 }
 0x11b   :  { %v144_v22 = vrot.slane %v143_v21, 2 }
 0x11d   :  { %v145_v23 = vadd.f32 %v144_v22, %v143_v21 }
 0x11f   :  { %v146_v24 = vrot.slane %v145_v23, 1 }
 0x121   :  { %v147_v25 = vadd.f32 %v146_v24, %v145_v23 }
 0x123   :  { %v148_v26 = vmul.f32 0.125, %v147_v25 }
 0x125   :  { %v151_v27 = vadd.f32 1e-06, %v148_v26 }
 0x127   :  { %214 = vrsqrt.f32 %v151_v27 }
 0x131   :  { %v215_v32 = vpop.eup %214 }
 0x132   :  { %v153_v33 = vmul.f32 %v215_v32, %v149_v30 }
 0x134   :  { %v157_v34 = vrot.slane %v153_v33, %v156_v31 }
 0x136   :  { %v158_v36 = vmul.f32 %v157_v34, %v140_v18 }
 0x138   :  { %v163_v37 = vadd.f32 %v183_v35, %v158_v36 }
 0x13a   :  { %216 = vtanh.f32 %v163_v37 }
 0x144   :  { %v217_v38 = vpop.eup %216 }
 0x145   :  { %165 = vst [vmem:[#allocation8] sm:$0xff] %v217_v38 }
 0x146   :  { %273 = shalt.err (!%p270_p6)
}
 0x147   :  { %s274_s18 = scalar_lea.hbm %s370_s3, 128 }
 0x148   :  { %p275_p7 = scmp.ne.s32.totalorder %s370_s3, %s274_s18  ;;  %p278_p8 = scmp.lt.u32.totalorder %s274_s18, %s370_s3 }
 0x14a   :  { %p280_p9 = pnand %p278_p8, %p275_p7 }
 0x14c   :  { %283 = shalt.err (!%p280_p9)
}
 0x14d   :  { %175 = dma.vmem_to_hbm [thread:$0]  %s173_s14, 128, %s370_s3, [#allocation5]  }
 0x14e   :  { %288 = dma.done.wait [#allocation5], 128  }
 0x14f   :  { %289 = vsyncadd [#allocation5], 4294967168 }
 0x150   :  { %179 = vsyncpa [#allocation4], 1 }
 0x151   :  { %180 = vsyncpa [#allocation7], 1 }
 0x152   :  { %181 = vsyncpa [#allocation5], 1 }

</bundles_post_ra>
